<compile_context>
chip_gen: v5e
topology: v5e:2x2
jax: 0.10.0
libtpu: 0.0.40
codegen_flags: <defaults>
</compile_context>

<pallas_src>
import jax
import jax.numpy as jnp
from jax import lax
from jax.experimental import pallas as pl
from jax.experimental.pallas import tpu as pltpu


def _make_bigram_kernel(write_logits):
    def kernel(tok_ref, tgt_ref, table_ref, *out_refs):
        """One grid step processes `tile_n` flattened rows.

        tok_ref    : VMEM (tile_n, 1)     int32   token ids (0 for padded rows)
        tgt_ref    : VMEM (tile_n, 1)     int32   targets (-1 marks padded rows)
        table_ref  : VMEM (V_PAD, V_PAD)  float32 resident embedding table
        logits_ref : VMEM (tile_n, V_PAD) float32 output tile (if write_logits)
        loss_ref   : VMEM (1, 1, V_PAD)   float32 per-tile partial NLL sum
        """
        if write_logits:
            logits_ref, loss_ref = out_refs
        else:
            (loss_ref,) = out_refs

        tok = tok_ref[...]                                     # (tile_n, 1)
        tgt = tgt_ref[...]                                     # (tile_n, 1)
        table = table_ref[...]                                 # (V_PAD, V_PAD)
        tile_n = tok.shape[0]
        v_pad = table.shape[1]

        lane = lax.broadcasted_iota(jnp.int32, (tile_n, v_pad), 1)

        # Embedding lookup as a vectorized one-hot row-select on the MXU
        # (no per-row scalar work, no masked stores).  HIGHEST precision keeps
        # the selected f32 table rows accurate enough for parity with a gather.
        one_hot = (tok == lane).astype(jnp.float32)            # (tile_n, V_PAD)
        logits = jnp.dot(one_hot, table,
                         precision=lax.Precision.HIGHEST,
                         preferred_element_type=jnp.float32)

        if write_logits:
            logits_ref[...] = logits          # single lane-dense full-tile store

        # Numerically-stable log-sum-exp.  Padded lanes carry -1e30 in the
        # table, so exp(-1e30 - m) underflows to exactly 0 and they drop out.
        m = jnp.max(logits, axis=-1, keepdims=True)
        lse = jnp.log(jnp.sum(jnp.exp(logits - m), axis=-1, keepdims=True)) + m

        # Target logit via compare/select (no float one-hot multiply).  If XLU
        # lane reductions ever bind on v6e/v7x this can be folded into the
        # sum-exp pass; at this size the kernel is HBM-writeback bound.
        tgt_logit = jnp.sum(jnp.where(tgt == lane, logits, 0.0),
                            axis=-1, keepdims=True)

        # Padded rows (tgt == -1) contribute nothing to the loss.
        valid = (tgt >= 0).astype(jnp.float32)
        nll_sum = jnp.sum((lse - tgt_logit) * valid)

        # Lane-dense partial-loss store (wrapper reads lane 0 of each tile).
        loss_ref[...] = jnp.broadcast_to(nll_sum.reshape(1, 1, 1), loss_ref.shape)

    return kernel


def _round_up(x, m):
    return (x + m - 1) // m * m


def bigram_forward(tokens, targets, table, *, tile_n=None, return_logits=True):
    """tokens: (B, T) int; targets: (B, T) int or None; table: (V, V) float32.

    Returns (flattened_logits (B*T, V), mean cross-entropy loss), matching
    BigramLanguageModel.forward (loss is None when targets is None).
    With return_logits=False only the loss is returned and the logits are
    never written back to HBM (loss-only fast path).
    """
    B, T = tokens.shape
    V = table.shape[0]
    N = B * T

    V_PAD = _round_up(max(V, 128), 128)          # lane-dense logits width
    if tile_n is None:
        # Large tiles amortize the ~0.35 us per-grid-step overhead, but keep
        # >= 2 grid steps when N allows it so both v7x TensorCores get work.
        tile_n = min(1024, max(8, _round_up((N + 1) // 2, 8)))
    N_pad = _round_up(N, tile_n)
    num_tiles = N_pad // tile_n

    NEG = jnp.float32(-1e30)
    table_p = jnp.full((V_PAD, V_PAD), NEG, dtype=jnp.float32)
    table_p = table_p.at[:V, :V].set(table.astype(jnp.float32))

    tok_p = jnp.zeros((N_pad, 1), jnp.int32).at[:N, 0].set(
        tokens.reshape(-1).astype(jnp.int32))
    if targets is None:
        tgt_p = jnp.full((N_pad, 1), -1, jnp.int32)
    else:
        tgt_p = jnp.full((N_pad, 1), -1, jnp.int32).at[:N, 0].set(
            targets.reshape(-1).astype(jnp.int32))

    out_shape = []
    out_specs = []
    if return_logits:
        out_shape.append(jax.ShapeDtypeStruct((N_pad, V_PAD), jnp.float32))
        out_specs.append(pl.BlockSpec((tile_n, V_PAD), lambda i: (i, 0)))
    out_shape.append(jax.ShapeDtypeStruct((num_tiles, 1, V_PAD), jnp.float32))
    out_specs.append(pl.BlockSpec((1, 1, V_PAD), lambda i: (i, 0, 0)))

    outs = pl.pallas_call(
        _make_bigram_kernel(return_logits),
        out_shape=tuple(out_shape),
        grid_spec=pltpu.PrefetchScalarGridSpec(
            num_scalar_prefetch=0,
            grid=(num_tiles,),
            in_specs=[
                pl.BlockSpec((tile_n, 1), lambda i: (i, 0)),      # token ids
                pl.BlockSpec((tile_n, 1), lambda i: (i, 0)),      # targets
                pl.BlockSpec((V_PAD, V_PAD), lambda i: (0, 0)),   # table (resident)
            ],
            out_specs=tuple(out_specs),
        ),
        compiler_params=pltpu.CompilerParams(
            # No carried state on the N axis -> shard across TensorCores on
            # v7x (megacore); harmless on single-TC v5e/v6e.
            dimension_semantics=("parallel",),
        ),
    )(tok_p, tgt_p, table_p)

    partials = outs[-1]
    loss = None
    if targets is not None:
        loss = jnp.sum(partials[:, 0, 0]) * (1.0 / N)   # mean cross-entropy

    if return_logits:
        logits = outs[0][:N, :V]
        return logits, loss
    return loss


if __name__ == "__main__":
    # Small shapes consistent with the module: B=2, T=8, vocab=64.
    B, T, V = 2, 8, 64
    key = jax.random.PRNGKey(0)
    k_tab, k_tok, k_tgt = jax.random.split(key, 3)

    # nn.Embedding default init: N(0, 1)
    table = jax.random.normal(k_tab, (V, V), dtype=jnp.float32)
    tokens = jax.random.randint(k_tok, (B, T), 0, V, dtype=jnp.int32)
    targets = jax.random.randint(k_tgt, (B, T), 0, V, dtype=jnp.int32)

    logits, loss = bigram_forward(tokens, targets, table)
    jax.block_until_ready((logits, loss))

    # Pure-JAX reference (embedding gather + mean cross-entropy), as in torch.
    ref_logits = table[tokens.reshape(-1)]
    ref_lse = jax.scipy.special.logsumexp(ref_logits, axis=-1)
    ref_tgt = jnp.take_along_axis(
        ref_logits, targets.reshape(-1, 1), axis=-1)[:, 0]
    ref_loss = jnp.mean(ref_lse - ref_tgt)

    assert logits.shape == (B * T, V)
    assert jnp.allclose(logits, ref_logits, atol=1e-4, rtol=1e-4), "logits mismatch"
    assert jnp.allclose(loss, ref_loss, atol=1e-4, rtol=1e-4), "loss mismatch"

    # Loss-only fast path (skips the logits HBM writeback entirely).
    loss_only = bigram_forward(tokens, targets, table, return_logits=False)
    jax.block_until_ready(loss_only)
    assert jnp.allclose(loss_only, ref_loss, atol=1e-4, rtol=1e-4), "loss-only mismatch"

    # TODO(synk): generate() (autoregressive torch.multinomial sampling) is
    # host-side control flow around this forward pass, not a kernel hot path.
    print("KERNEL_OK")
</pallas_src>

<mosaic_0001>
module attributes {stable_mosaic.version = 11 : i64} {
  func.func @kernel(%arg0: i32, %arg1: memref<8x1xi32, #tpu.memory_space<vmem>>, %arg2: memref<8x1xi32, #tpu.memory_space<vmem>>, %arg3: memref<128x128xf32, #tpu.memory_space<vmem>>, %arg4: memref<8x128xf32, #tpu.memory_space<vmem>>, %arg5: memref<1x1x128xf32, #tpu.memory_space<vmem>>) attributes {dimension_semantics = [#tpu.dimension_semantics<parallel>], iteration_bounds = array<i64: 2>, scalar_prefetch = 0 : i64, scratch_operands = 0 : i64, tpu.core_type = #tpu.core_type<tc>, window_params = [{transform_indices = @transform_0, window_bounds = array<i64: 8, 1>}, {transform_indices = @transform_1, window_bounds = array<i64: 8, 1>}, {pipeline_mode = #tpu.pipeline_mode<synchronous>, transform_indices = @transform_2, window_bounds = array<i64: 128, 128>}, {transform_indices = @transform_3, window_bounds = array<i64: 8, 128>}, {transform_indices = @transform_4, window_bounds = array<i64: 1, 1, 128>}]} {
    %c0 = arith.constant 0 : index
    %c0_0 = arith.constant 0 : index
    %0 = vector.load %arg1[%c0, %c0_0] : memref<8x1xi32, #tpu.memory_space<vmem>>, vector<8x1xi32>
    %c0_1 = arith.constant 0 : index
    %c0_2 = arith.constant 0 : index
    %1 = vector.load %arg2[%c0_1, %c0_2] : memref<8x1xi32, #tpu.memory_space<vmem>>, vector<8x1xi32>
    %c0_3 = arith.constant 0 : index
    %c0_4 = arith.constant 0 : index
    %2 = vector.load %arg3[%c0_3, %c0_4] : memref<128x128xf32, #tpu.memory_space<vmem>>, vector<128x128xf32>
    %3 = tpu.iota {dimensions = array<i32: 1>} : vector<8x128xi32>
    %4 = vector.broadcast %0 : vector<8x1xi32> to vector<8x128xi32>
    %5 = arith.cmpi eq, %4, %3 : vector<8x128xi32>
    %6 = arith.extui %5 : vector<8x128xi1> to vector<8x128xi32>
    %7 = arith.sitofp %6 : vector<8x128xi32> to vector<8x128xf32>
    %cst = arith.constant dense<0.000000e+00> : vector<8x128xf32>
    %8 = tpu.matmul %7, %2, %cst {dimension_numbers = #tpu.dot_dimension_numbers<[1], [0], [0], [1], [0, 0, 1, 1], [], []>, precision = #tpu.contract_precision<fp32>} : vector<8x128xf32>, vector<128x128xf32>, vector<8x128xf32> -> vector<8x128xf32>
    %c0_5 = arith.constant 0 : index
    %c0_6 = arith.constant 0 : index
    %9 = vector.load %arg4[%c0_5, %c0_6] : memref<8x128xf32, #tpu.memory_space<vmem>>, vector<8x128xf32>
    tpu.vector_store %arg4[%c0_5, %c0_6], %8 {strides = array<i32>} : memref<8x128xf32, #tpu.memory_space<vmem>>, vector<8x128xf32>,
    %cst_7 = arith.constant dense<0xFF800000> : vector<8xf32>
    %10 = vector.multi_reduction <maximumf>, %8, %cst_7 [1] : vector<8x128xf32> to vector<8xf32>
    %11 = vector.shape_cast %10 : vector<8xf32> to vector<8x1xf32>
    %12 = vector.broadcast %11 : vector<8x1xf32> to vector<8x128xf32>
    %13 = arith.subf %8, %12 : vector<8x128xf32>
    %14 = math.exp %13 : vector<8x128xf32>
    %cst_8 = arith.constant dense<0.000000e+00> : vector<8xf32>
    %15 = vector.multi_reduction <add>, %14, %cst_8 [1] : vector<8x128xf32> to vector<8xf32>
    %16 = vector.shape_cast %15 : vector<8xf32> to vector<8x1xf32>
    %17 = math.log %16 : vector<8x1xf32>
    %18 = arith.addf %17, %11 : vector<8x1xf32>
    %19 = vector.broadcast %1 : vector<8x1xi32> to vector<8x128xi32>
    %20 = arith.cmpi eq, %19, %3 : vector<8x128xi32>
    %cst_9 = arith.constant 0.000000e+00 : f32
    %21 = vector.broadcast %cst_9 : f32 to vector<8x128xf32>
    %22 = arith.select %20, %8, %21 : vector<8x128xi1>, vector<8x128xf32>
    %cst_10 = arith.constant dense<0.000000e+00> : vector<8xf32>
    %23 = vector.multi_reduction <add>, %22, %cst_10 [1] : vector<8x128xf32> to vector<8xf32>
    %24 = vector.shape_cast %23 : vector<8xf32> to vector<8x1xf32>
    %c0_i32 = arith.constant 0 : i32
    %25 = vector.broadcast %c0_i32 : i32 to vector<8x1xi32>
    %26 = arith.cmpi sge, %1, %25 : vector<8x1xi32>
    %27 = arith.extui %26 : vector<8x1xi1> to vector<8x1xi32>
    %28 = arith.sitofp %27 : vector<8x1xi32> to vector<8x1xf32>
    %29 = arith.subf %18, %24 : vector<8x1xf32>
    %30 = arith.mulf %29, %28 : vector<8x1xf32>
    %31 = vector.shape_cast %30 : vector<8x1xf32> to vector<1x8x1xf32>
    %cst_11 = arith.constant dense<0.000000e+00> : vector<1xf32>
    %32 = vector.multi_reduction <add>, %31, %cst_11 [1, 2] : vector<1x8x1xf32> to vector<1xf32>
    %33 = vector.shape_cast %32 : vector<1xf32> to vector<1x1x1xf32>
    %34 = vector.extract %33[0, 0, 0] : f32 from vector<1x1x1xf32>
    %35 = vector.broadcast %34 : f32 to vector<1x1x1xf32>
    %36 = vector.shape_cast %35 : vector<1x1x1xf32> to vector<1x1x1xf32>
    %37 = vector.broadcast %36 : vector<1x1x1xf32> to vector<1x1x128xf32>
    %c0_12 = arith.constant 0 : index
    %c0_13 = arith.constant 0 : index
    %c0_14 = arith.constant 0 : index
    %38 = vector.load %arg5[%c0_12, %c0_13, %c0_14] : memref<1x1x128xf32, #tpu.memory_space<vmem>>, vector<1x1x128xf32>
    tpu.vector_store %arg5[%c0_12, %c0_13, %c0_14], %37 {strides = array<i32>} : memref<1x1x128xf32, #tpu.memory_space<vmem>>, vector<1x1x128xf32>,
    return
  }
  func.func @transform_0(%arg0: i32) -> (i32, i32) {
    %c0_i32 = arith.constant 0 : i32
    %c0_i32_0 = arith.constant 0 : i32
    return %arg0, %c0_i32 : i32, i32
  }
  func.func @transform_1(%arg0: i32) -> (i32, i32) {
    %c0_i32 = arith.constant 0 : i32
    %c0_i32_0 = arith.constant 0 : i32
    return %arg0, %c0_i32 : i32, i32
  }
  func.func @transform_2(%arg0: i32) -> (i32, i32) {
    %c0_i32 = arith.constant 0 : i32
    %c0_i32_0 = arith.constant 0 : i32
    %c0_i32_1 = arith.constant 0 : i32
    return %c0_i32, %c0_i32_0 : i32, i32
  }
  func.func @transform_3(%arg0: i32) -> (i32, i32) {
    %c0_i32 = arith.constant 0 : i32
    %c0_i32_0 = arith.constant 0 : i32
    return %arg0, %c0_i32 : i32, i32
  }
  func.func @transform_4(%arg0: i32) -> (i32, i32, i32) {
    %c0_i32 = arith.constant 0 : i32
    %c0_i32_0 = arith.constant 0 : i32
    %c0_i32_1 = arith.constant 0 : i32
    return %arg0, %c0_i32, %c0_i32_0 : i32, i32, i32
  }
}

</mosaic_0001>

<bundles_post_ra>
// kernel: tpu_custom_call.1
= control target key start
LH: loop header
LB: loop body
LE: loop exit
PB: predicated region body
PF: predicated region fallthrough
CT: control target
= control target key end

     0   :  { %10 = vsyncpa [#allocation3], 0  ;;  %s1384_s0 = inlined_call_operand.vmem [shape: s32[16,1], index: 0, kind: input, shape index: {}]   ;;  %s1385_s1 = inlined_call_operand.vmem [shape: s32[16,1], index: 1, kind: input, shape index: {}]   ;;  %s1386_s2 = inlined_call_operand.hbm [shape: f32[128,128], index: 2, kind: input, shape index: {}]   ;;  %s1387_s3 = inlined_call_operand.hbm [shape: f32[16,128], index: 3, kind: output, shape index: {0}]   ;;  %s1388_s4 = inlined_call_operand.hbm [shape: f32[2,1,128], index: 4, kind: output, shape index: {1}]  }
   0x1   :  { %11 = vsyncpa [#allocation4], 0 }
   0x2   :  { %13 = vsyncpa [#allocation4 + $0x1], 0 }
   0x3   :  { %14 = vsyncpa [#allocation7], 0 }
   0x4   :  { %16 = vsyncpa [#allocation7 + $0x1], 0  ;;  %s1031_s15 = smov 0   ;;  %s1033_s16 = smov 0  }
   0x5   :  { %s1035_s17 = smov 0   ;;  %s1037_s18 = smov 0  }
   0x6 LB: > { %s1052_s19 = sadd.s32 4294967295, %s998_s18   ;;  %s784_s20 = sadd.s32 4294967294, %s998_s18   ;;  %s998_s18 = sphi %s1037_s18, %s1394_s18   ;;  %s994_s17 = sphi %s1035_s17, %s1393_s17   ;;  %s990_s16 = sphi %s1033_s16, %s1392_s16   ;;  %s986_s15 = sphi %s1031_s15, %s1391_s15  }
   0x7   : > { %s1056_s21 = sadd.s32 1, %s998_s18   ;;  %s102_s22 = sadd.s32 1, %s994_s17 }
   0x8   : > { %s99_s23 = ssub.s32 %s998_s18, %s1056_s21  ;;  %p112_p0 = scmp.ne.s32.totalorder %s994_s17, %s990_s16 }
   0x9   : > { %p100_p1 = scmp.eq.s32.totalorder %s99_s23, 0  ;;  %p113_p2 = scmp.eq.s32.totalorder %s1052_s19, 1 }
   0xa   : > { %p118_p3 = scmp.ne.s32.totalorder %s990_s16, %s986_s15  ;;  %p119_p4 = scmp.eq.s32.totalorder %s784_s20, 1 }
   0xb   : > { %s1067_s24 = scalar_select %p100_p1, %s994_s17, %s102_s22  }
   0xc   : > { %p1069_p5 = por %p113_p2, %p112_p0  ;;  %p1073_p6 = por %p119_p4, %p118_p3 }
   0xd   : > { %p785_p7 = scmp.ge.s32.totalorder %s998_s18, 1  ;;  %p152_p8 = scmp.lt.s32.totalorder %s998_s18, 3 }
   0xe   : > { %p823_p9 = scmp.eq.s32.totalorder %s1052_s19, 0  ;;  %s163_s29 = sshll.u32 %s1386_s2, 4  ;;  %s164_s29 = int_to_ptr.hbm [resolvable:$true] %s163_s29 }
   0xf   : > { %p153_p10 = pnand %p785_p7, %p152_p8  ;;  %s1000_s30 = smov [#allocation2]  }
  0x10   : > { %s165_s5 = sshll.u32 %s1000_s30, 4  ;;  %s1001_s6 = smov 128   ;;  %s166_s5 = int_to_ptr.vmem [resolvable:$true] %s165_s5 }
  0x11   : > { %p812_p11 = pneg %p153_p10  ;;  %s1002_s7 = smov 8  }
  0x12   : > { %195 = sbr.rel (%p153_p10) target bundleno = 735 (0x2df), region = 32 }
  0x13   : > { %p813_p12 = pnand %p823_p9, %p812_p11 }
  0x15   : > { %815 = dma.hbm_to_vmem [thread:$0]  (!%p813_p12), %s164_s29, 2048, %s166_s5, [#allocation3], %s1001_s6, %s1001_s6, %s1002_s7  }
  0x17   : > { %973 = dma.done.wait (%p823_p9), [#allocation3], 2048  }
  0x18   : > { %975 = vsyncadd (%p823_p9), [#allocation3], 4294965248  ;;  %p229_p13 = scmp.lt.s32.totalorder %s1052_s19, 1  ;;  %v1003_v0 = vmov 0   ;;  %v254_v2 = vld [vmem:[#allocation2 + $0x78] sm:$0xff]  ;;  %v253_v3 = vld [vmem:[#allocation2 + $0x70] sm:$0xff] }
  0x19   : > { %864 = vset.pattern.permute.xlu0 %v1003_v0  ;;  %865 = vset.pattern.permute.xlu1 %v1003_v0  ;;  %v1099_v4 = vand.u32 4294901760, %v254_v2  ;;  %v1101_v5 = vand.u32 4294901760, %v253_v3  ;;  %v252_v6 = vld [vmem:[#allocation2 + $0x68] sm:$0xff]  ;;  %v251_v7 = vld [vmem:[#allocation2 + $0x60] sm:$0xff]  ;;  %v250_v8 = vld [vmem:[#allocation2 + $0x58] sm:$0xff]  ;;  %s1333_s22 = sand.u32 1, %s990_s16  }
  0x1a   : > { %s1091_s8 = scalar_select %p229_p13, %s1052_s19, 1  ;;  %v1103_v9 = vand.u32 4294901760, %v252_v6  ;;  %v1105_v10 = vand.u32 4294901760, %v251_v7  ;;  %v1107_v11 = vand.u32 4294901760, %v250_v8  ;;  %v249_v12 = vld [vmem:[#allocation2 + $0x50] sm:$0xff]  ;;  %v248_v13 = vld [vmem:[#allocation2 + $0x48] sm:$0xff] }
  0x1b   : > { %v247_v14 = vld [vmem:[#allocation2 + $0x40] sm:$0xff]  ;;  %v1110_v15 = vsub.f32 %v254_v2, %v1099_v4  ;;  %v1113_v16 = vsub.f32 %v253_v3, %v1101_v5  ;;  %264 = vmatpush.msra.mxu0 %v1099_v4  ;;  %v1116_v17 = vand.u32 4294901760, %v249_v12  ;;  %v1118_v18 = vand.u32 4294901760, %v248_v13  ;;  %460 = vmatpush.msra.mxu3 %v1099_v4  ;;  %v246_v35 = vld [vmem:[#allocation2 + $0x38] sm:$0xff]  ;;  %v245_v36 = vld [vmem:[#allocation2 + $0x30] sm:$0xff]  ;;  %s790_s23 = sshll.u32 %s1333_s22, 3 }
  0x1c   : > { %s791_s9 = sshll.u32 %s1091_s8, 3  ;;  %v1122_v19 = vsub.f32 %v252_v6, %v1103_v9  ;;  %v1125_v20 = vsub.f32 %v251_v7, %v1105_v10  ;;  %v1128_v21 = vsub.f32 %v250_v8, %v1107_v11  ;;  %v1130_v22 = vand.u32 4294901760, %v247_v14  ;;  %v244_v40 = vld [vmem:[#allocation2 + $0x28] sm:$0xff]  ;;  %v243_v42 = vld [vmem:[#allocation2 + $0x20] sm:$0xff]  ;;  %v242_v50 = vld [vmem:[#allocation2 + $0x18] sm:$0xff]  ;;  %s222_s27 = scalar_lea.vmem [#allocation5], %s790_s23 }
  0x1d   : > { %s232_s12 = scalar_lea.vmem %s1384_s0, %s791_s9  ;;  %v306_v23 = vand.u32 4294901760, %v1110_v15  ;;  %v312_v24 = vand.u32 4294901760, %v1113_v16  ;;  %v1135_v25 = vsub.f32 %v249_v12, %v1116_v17  ;;  %266 = vmatpush.msra.mxu0 %v1101_v5  ;;  %407 = vmatpush.msra.mxu2 %v1110_v15  ;;  %v1142_v28 = vsub.f32 %v248_v13, %v1118_v18  ;;  %v241_v56 = vld [vmem:[#allocation2 + $0x10] sm:$0xff]  ;;  %v240_v62 = vld [vmem:[#allocation2 + $0x8] sm:$0xff]  ;;  %v239_v6 = vld [vmem:[#allocation2] sm:$0xff]  ;;  %s236_s20 = scalar_lea.vmem %s1385_s1, %s791_s9 }
  0x1e   : > { %v237_v1 = vld [vmem:[%s232_s12] sm:$0xff]  ;;  %v318_v26 = vand.u32 4294901760, %v1122_v19  ;;  %v324_v27 = vand.u32 4294901760, %v1125_v20  ;;  %462 = vmatpush.msra.mxu3 %v1101_v5  ;;  %v330_v31 = vand.u32 4294901760, %v1128_v21  ;;  %v1159_v34 = vsub.f32 %v247_v14, %v1130_v22  ;;  %s799_s28 = sshll.u32 %s1052_s19, 3  ;;  %s657_s6 = sshll.u32 %s222_s27, 4  ;;  %s658_s6 = int_to_ptr.vmem [resolvable:$true] %s657_s6 }
  0x1f   : > { %258 = vperm.xlu0 %864, %v237_v1   ;;  %v307_v29 = vsub.f32 %v1110_v15, %v306_v23  ;;  %v313_v30 = vsub.f32 %v1113_v16, %v312_v24  ;;  %268 = vmatpush.msra.mxu0 %v1103_v9  ;;  %v336_v33 = vand.u32 4294901760, %v1135_v25  ;;  %v342_v41 = vand.u32 4294901760, %v1142_v28  ;;  %s655_s5 = scalar_lea.hbm %s1387_s3, %s799_s28  ;;  %s641_s8 = scalar_lea.sflag [#allocation4], %s1333_s22 }
  0x20   : > { %410 = vmatpush.msra.mxu2 %v1113_v16  ;;  %v319_v32 = vsub.f32 %v1122_v19, %v318_v26  ;;  %464 = vmatpush.msra.mxu3 %v1103_v9  ;;  %v325_v39 = vsub.f32 %v1125_v20, %v324_v27  ;;  %v331_v44 = vsub.f32 %v1128_v21, %v330_v31  ;;  %v1172_v45 = vand.u32 4294901760, %v246_v35  ;;  %s659_s7 = sshll.u32 %s655_s5, 4  ;;  %s920_s13 = scalar_lea.hbm %s1387_s3, 16  ;;  %s660_s7 = int_to_ptr.hbm [resolvable:$true] %s659_s7 }
  0x21   : > { %v308_v37 = vand.u32 4294901760, %v307_v29  ;;  %v314_v38 = vand.u32 4294901760, %v313_v30  ;;  %270 = vmatpush.msra.mxu0 %v1105_v10  ;;  %v1175_v46 = vand.u32 4294901760, %v245_v36  ;;  %v337_v47 = vsub.f32 %v1135_v25, %v336_v33  ;;  %s914_s9 = sshra.s32 %s660_s7, 4  ;;  %s915_s9 = int_to_ptr.hbm [resolvable:$true] %s914_s9 }
  0x22   : > { %413 = vmatpush.msra.mxu2 %v1122_v19  ;;  %466 = vmatpush.msra.mxu3 %v1105_v10  ;;  %v320_v43 = vand.u32 4294901760, %v319_v32  ;;  %v348_v48 = vand.u32 4294901760, %v1159_v34  ;;  %v1181_v49 = vand.u32 4294901760, %v244_v40  ;;  %v326_v51 = vand.u32 4294901760, %v325_v39  ;;  %s916_s10 = scalar_lea.hbm %s915_s9, 8  ;;  %p921_p3 = scmp.lt.s32.totalorder %s915_s9, %s1387_s3 }
  0x23   : > { %309 = vmatpush.msra.mxu1 %v308_v37  ;;  %272 = vmatpush.msra.mxu0 %v1107_v11  ;;  %v1186_v52 = vsub.f32 %v246_v35, %v1172_v45  ;;  %v1189_v53 = vsub.f32 %v245_v36, %v1175_v46  ;;  %v1192_v54 = vand.u32 4294901760, %v243_v42  ;;  %v343_v55 = vsub.f32 %v1142_v28, %v342_v41  ;;  %p917_p0 = scmp.ne.s32.totalorder %s915_s9, %s916_s10  ;;  %p922_p4 = scmp.lt.s32.totalorder %s920_s13, %s916_s10 }
  0x24   : > { %416 = vmatpush.msra.mxu2 %v1125_v20  ;;  %468 = vmatpush.msra.mxu3 %v1107_v11  ;;  %v332_v57 = vand.u32 4294901760, %v331_v44  ;;  %v1201_v59 = vsub.f32 %v244_v40, %v1181_v49  ;;  %v1204_v60 = vand.u32 4294901760, %v242_v50  ;;  %v349_v61 = vsub.f32 %v1159_v34, %v348_v48 }
  0x25   : > { %315 = vmatpush.msra.mxu1 %v314_v38  ;;  %274 = vmatpush.msra.mxu0 %v1116_v17  ;;  %v354_v58 = vand.u32 4294901760, %v1186_v52  ;;  %v338_v63 = vand.u32 4294901760, %v337_v47  ;;  %v360_v0 = vand.u32 4294901760, %v1189_v53  ;;  %v1213_v1 = vsub.f32 %v243_v42, %v1192_v54  ;;  %p918_p1 = pnand %p917_p0, %p1069_p5  ;;  %p923_p7 = por %p922_p4, %p921_p3 }
  0x26   : > { %419 = vmatpush.msra.mxu2 %v1128_v21  ;;  %470 = vmatpush.msra.mxu3 %v1116_v17  ;;  %v1216_v2 = vand.u32 4294901760, %v241_v56  ;;  %v344_v3 = vand.u32 4294901760, %v343_v55  ;;  %v366_v8 = vand.u32 4294901760, %v1201_v59  ;;  %v1225_v12 = vsub.f32 %v242_v50, %v1204_v60 }
  0x27   : > { %321 = vmatpush.msra.mxu1 %v320_v43  ;;  %276 = vmatpush.msra.mxu0 %v1118_v18  ;;  %v355_v7 = vsub.f32 %v1186_v52, %v354_v58  ;;  %v1228_v13 = vand.u32 4294901760, %v240_v62  ;;  %v350_v14 = vand.u32 4294901760, %v349_v61  ;;  %v361_v29 = vsub.f32 %v1189_v53, %v360_v0  ;;  %p919_p2 = pneg %p918_p1 }
  0x28   : > { %422 = vmatpush.msra.mxu2 %v1135_v25  ;;  %472 = vmatpush.msra.mxu3 %v1118_v18  ;;  %v372_v30 = vand.u32 4294901760, %v1213_v1  ;;  %v1237_v32 = vsub.f32 %v241_v56, %v1216_v2  ;;  %v1240_v35 = vand.u32 4294901760, %v239_v6  ;;  %v367_v37 = vsub.f32 %v1201_v59, %v366_v8 }
  0x29   : > { %327 = vmatpush.msra.mxu1 %v326_v51  ;;  %278 = vmatpush.msra.mxu0 %v1130_v22  ;;  %v356_v36 = vand.u32 4294901760, %v355_v7  ;;  %v378_v38 = vand.u32 4294901760, %v1225_v12  ;;  %v1249_v39 = vsub.f32 %v240_v62, %v1228_v13  ;;  %v362_v40 = vand.u32 4294901760, %v361_v29  ;;  %p924_p8 = pnand %p923_p7, %p919_p2 }
  0x2a   : > { %425 = vmatpush.msra.mxu2 %v1142_v28  ;;  %474 = vmatpush.msra.mxu3 %v1130_v22  ;;  %v373_v42 = vsub.f32 %v1213_v1, %v372_v30  ;;  %v384_v43 = vand.u32 4294901760, %v1237_v32  ;;  %v1259_v44 = vsub.f32 %v239_v6, %v1240_v35  ;;  %v368_v47 = vand.u32 4294901760, %v367_v37 }
  0x2b   : > { %333 = vmatpush.msra.mxu1 %v332_v57  ;;  %280 = vmatpush.msra.mxu0 %v1172_v45  ;;  %v379_v50 = vsub.f32 %v1225_v12, %v378_v38  ;;  %v390_v51 = vand.u32 4294901760, %v1249_v39  ;;  %v1005_v16 = vmov 1.0   ;;  %vm627_vm3 = vcmask 7168  }
  0x2c   : > { %428 = vmatpush.msra.mxu2 %v1159_v34  ;;  %476 = vmatpush.msra.mxu3 %v1172_v45  ;;  %v374_v55 = vand.u32 4294901760, %v373_v42  ;;  %v385_v56 = vsub.f32 %v1237_v32, %v384_v43  ;;  %v396_v57 = vand.u32 4294901760, %v1259_v44 }
  0x2d   : > { %339 = vmatpush.msra.mxu1 %v338_v63  ;;  %282 = vmatpush.msra.mxu0 %v1175_v46  ;;  %v380_v61 = vand.u32 4294901760, %v379_v50  ;;  %v391_v62 = vsub.f32 %v1249_v39, %v390_v51 }
  0x2e   : > { %431 = vmatpush.msra.mxu2 %v1186_v52  ;;  %478 = vmatpush.msra.mxu3 %v1175_v46  ;;  %v386_v63 = vand.u32 4294901760, %v385_v56 }
  0x2f   : > { %345 = vmatpush.msra.mxu1 %v344_v3  ;;  %284 = vmatpush.msra.mxu0 %v1181_v49  ;;  %v397_v3 = vsub.f32 %v1259_v44, %v396_v57  ;;  %v392_v6 = vand.u32 4294901760, %v391_v62 }
  0x30   : > { %434 = vmatpush.msra.mxu2 %v1189_v53  ;;  %480 = vmatpush.msra.mxu3 %v1181_v49 }
  0x31   : > { %351 = vmatpush.msra.mxu1 %v350_v14  ;;  %286 = vmatpush.msra.mxu0 %v1192_v54  ;;  %v398_v7 = vand.u32 4294901760, %v397_v3 }
  0x32   : > { %437 = vmatpush.msra.mxu2 %v1201_v59  ;;  %482 = vmatpush.msra.mxu3 %v1192_v54 }
  0x33   : > { %357 = vmatpush.msra.mxu1 %v356_v36  ;;  %288 = vmatpush.msra.mxu0 %v1204_v60 }
  0x34   : > { %440 = vmatpush.msra.mxu2 %v1213_v1  ;;  %484 = vmatpush.msra.mxu3 %v1204_v60 }
  0x35   : > { %363 = vmatpush.msra.mxu1 %v362_v40  ;;  %290 = vmatpush.msra.mxu0 %v1216_v2 }
  0x36   : > { %443 = vmatpush.msra.mxu2 %v1225_v12  ;;  %486 = vmatpush.msra.mxu3 %v1216_v2 }
  0x37   : > { %369 = vmatpush.msra.mxu1 %v368_v47  ;;  %292 = vmatpush.msra.mxu0 %v1228_v13 }
  0x38   : > { %446 = vmatpush.msra.mxu2 %v1237_v32  ;;  %488 = vmatpush.msra.mxu3 %v1228_v13 }
  0x39   : > { %375 = vmatpush.msra.mxu1 %v374_v55  ;;  %294 = vmatpush.msra.mxu0 %v1240_v35 }
  0x3a   : > { %449 = vmatpush.msra.mxu2 %v1249_v39  ;;  %490 = vmatpush.msra.mxu3 %v1240_v35 }
  0x3b   : > { %501 = vmatpush.msrb.mxu0 %v306_v23  ;;  %381 = vmatpush.msra.mxu1 %v380_v61 }
  0x3c   : > { %452 = vmatpush.msra.mxu2 %v1259_v44 }
  0x3d   : > { %505 = vmatpush.msrb.mxu0 %v312_v24  ;;  %387 = vmatpush.msra.mxu1 %v386_v63 }
  0x3f   : > { %509 = vmatpush.msrb.mxu0 %v318_v26  ;;  %393 = vmatpush.msra.mxu1 %v392_v6 }
  0x41   : > { %513 = vmatpush.msrb.mxu0 %v324_v27  ;;  %399 = vmatpush.msra.mxu1 %v398_v7 }
  0x43   : > { %568 = vmatpush.msrb.mxu1 %v1099_v4  ;;  %517 = vmatpush.msrb.mxu0 %v330_v31  ;;  %v238_v4 = vld [vmem:[%s236_s20] sm:$0xff] }
  0x44   : > { %616 = vperm.xlu1 %865, %v238_v4   ;;  %vm622_vm0 = vcmp.ge.s32.totalorder %v238_v4, 0 }
  0x45   : > { %570 = vmatpush.msrb.mxu1 %v1101_v5  ;;  %521 = vmatpush.msrb.mxu0 %v336_v33  ;;  %v1004_v5 = vmov 0.0  }
  0x47   : > { %572 = vmatpush.msrb.mxu1 %v1103_v9  ;;  %525 = vmatpush.msrb.mxu0 %v342_v41  ;;  %v797_v9 = vsel %vm622_vm0, 1.0, %v1004_v5 }
  0x49   : > { %574 = vmatpush.msrb.mxu1 %v1105_v10  ;;  %529 = vmatpush.msrb.mxu0 %v348_v48  ;;  %v255_v10 = vlaneseq }
  0x4b   : > { %576 = vmatpush.msrb.mxu1 %v1107_v11  ;;  %533 = vmatpush.msrb.mxu0 %v354_v58  ;;  %v256_v11 = vand.u32 127, %v255_v10 }
  0x4d   : > { %578 = vmatpush.msrb.mxu1 %v1116_v17  ;;  %537 = vmatpush.msrb.mxu0 %v360_v0 }
  0x4f   : > { %580 = vmatpush.msrb.mxu1 %v1118_v18  ;;  %541 = vmatpush.msrb.mxu0 %v366_v8 }
  0x51   : > { %582 = vmatpush.msrb.mxu1 %v1130_v22  ;;  %545 = vmatpush.msrb.mxu0 %v372_v30 }
  0x53   : > { %584 = vmatpush.msrb.mxu1 %v1172_v45  ;;  %549 = vmatpush.msrb.mxu0 %v378_v38 }
  0x55   : > { %586 = vmatpush.msrb.mxu1 %v1175_v46  ;;  %553 = vmatpush.msrb.mxu0 %v384_v43 }
  0x57   : > { %588 = vmatpush.msrb.mxu1 %v1181_v49  ;;  %557 = vmatpush.msrb.mxu0 %v390_v51 }
  0x59   : > { %590 = vmatpush.msrb.mxu1 %v1192_v54  ;;  %561 = vmatpush.msrb.mxu0 %v396_v57 }
  0x5b   : > { %592 = vmatpush.msrb.mxu1 %v1204_v60 }
  0x5d   : > { %594 = vmatpush.msrb.mxu1 %v1216_v2 }
  0x5f   : > { %596 = vmatpush.msrb.mxu1 %v1228_v13 }
  0x61   : > { %598 = vmatpush.msrb.mxu1 %v1240_v35 }
  0x91   : > { %v259_v15 = vpop.permute.xlu0 %258 }
  0x92   : > { %vm260_vm1 = vcmp.eq.s32.totalorder %v259_v15, %v256_v11 }
  0x93   : > { %794 = vmatmul.msk.f32.vlgmr.msra.gmra.mxu1 %vm260_vm1, %v1005_v16  ;;  %v793_v17 = vsel %vm260_vm1, 1.0, %v1004_v5 }
  0x94   : > { %v296_v18 = vsub.f32 %v793_v17, %v793_v17 }
  0x96   : > { %455 = vmatmul.f32.vlgmr.msra.gmra.mxu2 %v296_v18  ;;  %v297_v19 = vand.u32 4294901760, %v296_v18 }
  0x98   : > { %494 = vmatmul.f32.vlgmr.msra.gmra.mxu3 %v297_v19  ;;  %v298_v20 = vsub.f32 %v296_v18, %v297_v19 }
  0x9a   : > { %v299_v21 = vand.u32 4294901760, %v298_v20 }
  0x9b   : > { %796 = vmatmul.msk.f32.vlgmr.msrb.gmra.mxu1 %vm260_vm1, %v1005_v16 }
  0x9c   : > { %300 = vmatmul.f32.vlgmr.msra.gmra.mxu0 %v299_v21 }
  0xa4   : > { %795 = vmatmul.msk.f32.vlgmr.msrb.gmra.mxu0 %vm260_vm1, %v1005_v16 }
  0xb6   : > { %v617_v31 = vpop.permute.xlu1 %616 }
  0xb7   : > { %vm618_vm2 = vcmp.eq.s32.totalorder %v617_v31, %v256_v11 }
 0x110   : > { %v402_v22 = vpop.f32.mrf.mxu1 }
 0x118   : > { %v601_v41 = vpop.f32.mrf.mxu1 }
 0x119   : > { %v301_v23 = vpop.f32.mrf.mxu0  ;;  %v456_v25 = vpop.f32.mrf.mxu2 }
 0x11a   : > { %v403_v24 = vadd.f32 %v402_v22, %v301_v23 }
 0x11b   : > { %v495_v27 = vpop.f32.mrf.mxu3 }
 0x11c   : > { %v457_v26 = vadd.f32 %v456_v25, %v403_v24 }
 0x11e   : > { %v496_v28 = vadd.f32 %v495_v27, %v457_v26 }
 0x121   : > { %v564_v33 = vpop.f32.mrf.mxu0 }
 0x122   : > { %v565_v34 = vadd.f32 %v564_v33, %v496_v28 }
 0x124   : > { %v602_v45 = vadd.f32 %v601_v41, %v565_v34 }
 0x126   : > { %605 = vmax.xlane.f32.xlu0 %v602_v45  ;;  %v619_v46 = vsel %vm618_vm2, %v602_v45, 0.0  ;;  %604 = vst [vmem:[%s222_s27] sm:$0xff] %v602_v45 }
 0x127   : > { %620 = vadd.xlane.f32.xlu2 %v619_v46 }
 0x199   : > { %v606_v48 = vpop.xlane.xlu0 %605 }
 0x19a   : > { %v607_v49 = vsub.f32 %v602_v45, %v606_v48  ;;  %v621_v0 = vpop.xlane.xlu2 %620 }
 0x19c   : > { %v608_v52 = vmul.f32 1.442695, %v607_v49 }
 0x19e   : > { %866 = vpow2.f32 %v608_v52 }
 0x1a4   : > { %v867_v53 = vpop.eup %866 }
 0x1a5   : > { %610 = vadd.xlane.f32.xlu1 %v867_v53 }
 0x218   : > { %v611_v54 = vpop.xlane.xlu1 %610 }
 0x219   : > { %868 = vlog2.f32 %v611_v54 }
 0x21f   : > { %v869_v58 = vpop.eup %868 }
 0x220   : > { %v613_v59 = vmul.f32 0.6931472, %v869_v58 }
 0x222   : > { %v614_v60 = vadd.f32 %v613_v59, %v606_v48 }
 0x224   : > { %v625_v1 = vsub.f32 %v614_v60, %v621_v0 }
 0x226   : > { %v626_v2 = vmul.f32 %v797_v9, %v625_v1 }
 0x228   : > { %v628_v8 = vsel %vm627_vm3, %v626_v2, 0.0 }
 0x229   : > { %629 = vadd.xlane.f32.xlu2 %v628_v8 }
 0x22a   : > { %927 = shalt.err (!%p924_p8)
}
 0x22b   : > { %808 = dma.vmem_to_hbm [thread:$0]  (%p1069_p5), %s658_s6, 128, %s660_s7, %s641_s8  }
 0x22c   : > { %s668_s28 = scalar_lea.hbm %s1388_s4, %s1052_s19  ;;  %s228_s29 = scalar_lea.vmem [#allocation6], %s1333_s22 }
 0x22d   : > { %s670_s30 = sshll.u32 %s228_s29, 4  ;;  %s672_s5 = sshll.u32 %s668_s28, 4  ;;  %s671_s30 = int_to_ptr.vmem [resolvable:$true] %s670_s30  ;;  %s673_s5 = int_to_ptr.hbm [resolvable:$true] %s672_s5 }
 0x22e   : > { %s646_s6 = scalar_lea.sflag [#allocation7], %s1333_s22  ;;  %s942_s7 = sshra.s32 %s673_s5, 4  ;;  %s943_s7 = int_to_ptr.hbm [resolvable:$true] %s942_s7 }
 0x22f   : > { %s944_s8 = scalar_lea.hbm %s943_s7, 1  ;;  %s948_s19 = scalar_lea.hbm %s1388_s4, 2 }
 0x230   : > { %p945_p9 = scmp.ne.s32.totalorder %s943_s7, %s944_s8  ;;  %p949_p12 = scmp.lt.s32.totalorder %s943_s7, %s1388_s4 }
 0x231   : > { %p950_p13 = scmp.lt.s32.totalorder %s948_s19, %s944_s8 }
 0x232   : > { %p946_p10 = pnand %p945_p9, %p1069_p5 }
 0x233   : > { %p951_p0 = por %p950_p13, %p949_p12 }
 0x234   : > { %p947_p11 = pneg %p946_p10 }
 0x236   : > { %p952_p1 = pnand %p951_p0, %p947_p11 }
 0x29c   : > { %v630_v12 = vpop.xlane.xlu2 %629 }
 0x29d   : > { %v631_v13 = vrot.slane %v630_v12, 4 }
 0x29f   : > { %v632_v14 = vadd.f32 %v631_v13, %v630_v12 }
 0x2a1   : > { %v633_v29 = vrot.slane %v632_v14, 2 }
 0x2a3   : > { %v634_v30 = vadd.f32 %v633_v29, %v632_v14 }
 0x2a5   : > { %v635_v32 = vrot.slane %v634_v30, 1 }
 0x2a7   : > { %v636_v35 = vadd.f32 %v635_v32, %v634_v30 }
 0x2a9   : > { %802 = vpush %v636_v35 }
 0x2da   : > { %s803_s9 = spop %802 }
 0x2db   : > { %v638_v36 = vstv %s803_s9 }
 0x2dc   : > { %639 = vst [vmem:[%s228_s29] sm:$0x1] %v638_v36 }
 0x2dd   : > { %955 = shalt.err (!%p952_p1)
}
 0x2de   : > { %809 = dma.vmem_to_hbm [thread:$0]  (%p1069_p5), %s671_s30, 16, %s673_s5, %s646_s6  }
 0x2df PF: > { %p825_p2 = scmp.ge.s32.totalorder %s998_s18, 2  ;;  %s684_s22 = sand.u32 1, %s986_s15  }
 0x2e0   : > { %s685_s14 = scalar_lea.sflag [#allocation4], %s684_s22 }
 0x2e1   : > { %p817_p3 = pnand %p825_p2, %p1073_p6 }
 0x2e3   : > { %p818_p4 = pneg %p817_p3 }
 0x2e5   : > { %977 = dma.done.wait (%p818_p4), %s685_s14, 128  }
 0x2e6   : > { %979 = vsyncadd (%p818_p4), %s685_s14, 4294967168  ;;  %s695_s20 = scalar_lea.sflag [#allocation7], %s684_s22 }
 0x2e7   : > { %981 = dma.done.wait (%p818_p4), %s695_s20, 16  }
 0x2e8   : > { %983 = vsyncadd (%p818_p4), %s695_s20, 4294967280  ;;  %p19_p5 = scmp.ge.s32.totalorder %s1056_s21, 4   ;;  %s1391_s15 = smov %s990_s16 }
 0x2e9   : > { %s1392_s16 = smov %s994_s17  ;;  %s1393_s17 = smov %s1067_s24 }
 0x2ea   : > { %s1394_s18 = smov %s1056_s21  ;;  %21 = sbr.rel (!%p19_p5) target bundleno = 6 (0x6), region = 92 }
 0x2ef   :  { %700 = vsyncpa [#allocation3], 1 }
 0x2f0   :  { %702 = vsyncpa [#allocation3 + $0x1], 1 }
 0x2f1   :  { %703 = vsyncpa [#allocation4], 1 }
 0x2f2   :  { %705 = vsyncpa [#allocation4 + $0x1], 1 }
 0x2f3   :  { %706 = vsyncpa [#allocation7], 1 }
 0x2f4   :  { %708 = vsyncpa [#allocation7 + $0x1], 1 }

</bundles_post_ra>
